<compile_context>
chip_gen: v6e
topology: v6e:2x2x1
jax: 0.10.0
libtpu: 0.0.40
codegen_flags: <defaults>
</compile_context>

<pallas_src>
import jax
import jax.numpy as jnp
from jax.experimental import pallas as pl
from jax.experimental.pallas import tpu as pltpu

LANE = 128            # lane width on all TPU generations
SUBLANE_PAD = 16      # batch-row granularity (covers bf16 sublane packing)
MAX_TILE_B = 512      # ~85% of HBM roofline for mem-bound tiles


def _round_up(x, m):
    return ((x + m - 1) // m) * m


def _cdiv(a, b):
    return (a + b - 1) // b


# --------------------------------------------------------------------------- #
# Kernel
# --------------------------------------------------------------------------- #
def _policy_kernel(s_ref, w1_ref, b1_ref, w2_ref, b2_ref, wm_ref, bm_ref,
                   scale_ref, bias_ref, out_ref):
    # bf16 cast of the streamed state happens here (VPU filler under the MXU)
    # instead of as a separate XLA pass in the wrapper.
    s = s_ref[...].astype(jnp.bfloat16)
    # layer 1: linear (bf16 operands, f32 accumulate) + ReLU
    x = jnp.dot(s, w1_ref[...], preferred_element_type=jnp.float32) + b1_ref[...]
    x = jnp.maximum(x, 0.0)
    # layer 2: linear + ReLU
    x = jnp.dot(x.astype(jnp.bfloat16), w2_ref[...],
                preferred_element_type=jnp.float32) + b2_ref[...]
    x = jnp.maximum(x, 0.0)
    # mean head: linear + tanh + affine action transform (scale=1, bias=0 when
    # action_space is None -> two cheap f32 VPU ops).
    m = jnp.dot(x.astype(jnp.bfloat16), wm_ref[...],
                preferred_element_type=jnp.float32) + bm_ref[...]
    m = jnp.tanh(m)
    out_ref[...] = (m * scale_ref[...] + bias_ref[...]).astype(out_ref.dtype)


# --------------------------------------------------------------------------- #
# Parameter prep: pad feature dims to 128 lanes, cast weights to bf16, pack
# action scale/bias.  Done once per module, not per forward call.
# --------------------------------------------------------------------------- #
def prepare_params(params, action_scale=1.0, action_bias=0.0):
    d_in, h = params["w1"].shape
    _, a = params["wm"].shape
    h_p, a_p = _round_up(h, LANE), _round_up(a, LANE)

    def pad2(w, rows, cols):
        return jnp.pad(w, ((0, rows - w.shape[0]), (0, cols - w.shape[1])))

    def act_vec(v):
        # Accept python scalar or per-action vector ((high-low)/2, (high+low)/2).
        v = jnp.asarray(v, jnp.float32).reshape(1, -1)
        if v.shape[1] == 1:
            v = jnp.broadcast_to(v, (1, a))
        return pad2(v, 1, a_p)

    prepared = {
        # NOTE: W1 rows are NOT padded -> state streams at its original d_in.
        "w1": pad2(params["w1"], d_in, h_p).astype(jnp.bfloat16),
        "b1": pad2(params["b1"], 1, h_p).astype(jnp.float32),
        "w2": pad2(params["w2"], h_p, h_p).astype(jnp.bfloat16),
        "b2": pad2(params["b2"], 1, h_p).astype(jnp.float32),
        "wm": pad2(params["wm"], h_p, a_p).astype(jnp.bfloat16),
        "bm": pad2(params["bm"], 1, a_p).astype(jnp.float32),
        "scale": act_vec(action_scale),
        "bias": act_vec(action_bias),
    }
    dims = {"num_inputs": d_in, "hidden_dim": h, "num_actions": a}
    return prepared, dims


# --------------------------------------------------------------------------- #
# Tiling / VMEM sizing
# --------------------------------------------------------------------------- #
def _pick_tile_b(B):
    if B >= 2 * MAX_TILE_B:
        return MAX_TILE_B
    if B >= 2 * LANE:
        # >=2 grid steps (v7x dual-TC sharding), 128-row granularity for MXU.
        return _round_up(_cdiv(B, 2), LANE)
    if B >= 2 * SUBLANE_PAD:
        return _round_up(_cdiv(B, 2), SUBLANE_PAD)
    # Tiny batch: one block of exactly the array shape (always legal).
    return B


def _vmem_cap_bytes():
    # v7x: 64 MiB VMEM per TensorCore -> keep headroom.  v5e/v6e: 128 MiB.
    try:
        kind = jax.devices()[0].device_kind.lower()
    except Exception:
        kind = ""
    return (40 << 20) if "v7" in kind else (96 << 20)


def _resident_bytes(d_in, h_p, a_p):
    weights = 2 * (d_in * h_p + h_p * h_p + h_p * a_p)   # bf16, single-buffered
    vecs = 4 * (2 * h_p + 3 * a_p)                       # f32 biases + scale/bias
    return weights + vecs


def _vmem_limit_bytes(tile_b, d_in, h_p, a_p, cap):
    io = 2 * (tile_b * d_in * 4 + tile_b * a_p * 4)      # streamed in/out, 2x buffered
    acts = 4 * tile_b * (2 * h_p + a_p)                  # f32 intermediates
    est = _resident_bytes(d_in, h_p, a_p) + io + acts
    est = int(est * 1.25) + (4 << 20)                    # ~25% + Mosaic internal scratch
    return min(max(est, 16 << 20), cap)


# --------------------------------------------------------------------------- #
# Forward pass
# --------------------------------------------------------------------------- #
def deterministic_policy_forward(state, prepared, dims, out_dtype=jnp.float32):
    """state: (B, num_inputs) f32.  prepared/dims from prepare_params()."""
    B, d_in = state.shape
    h_p = prepared["w2"].shape[0]
    a_p = prepared["wm"].shape[1]
    n_act = dims["num_actions"]

    cap = _vmem_cap_bytes()
    if _resident_bytes(d_in, h_p, a_p) > int(0.8 * cap):
        # TODO(synk): add a hidden-dim (K) reduction grid axis ("arbitrary")
        # so very large hidden_dim fits v7x's 64 MiB VMEM; not needed here.
        raise NotImplementedError(
            "resident weights exceed the VMEM budget; K-tiling not implemented")

    tile_b = _pick_tile_b(B)
    grid = (_cdiv(B, tile_b),)

    batch_map = lambda i: (i, 0)
    const_map = lambda i: (0, 0)

    def run(single_buffer_weights):
        if single_buffer_weights:
            # Constant-index blocks never change -> single buffer is enough.
            res = lambda shape: pl.BlockSpec(shape, const_map,
                                             pipeline_mode=pl.Buffered(1))
        else:
            res = lambda shape: pl.BlockSpec(shape, const_map)
        return pl.pallas_call(
            _policy_kernel,
            out_shape=jax.ShapeDtypeStruct((B, a_p), out_dtype),
            grid=grid,
            in_specs=[
                pl.BlockSpec((tile_b, d_in), batch_map),  # state (streamed, unpadded f32)
                res((d_in, h_p)), res((1, h_p)),          # W1, b1 (resident)
                res((h_p, h_p)), res((1, h_p)),           # W2, b2
                res((h_p, a_p)), res((1, a_p)),           # Wm, bm
                res((1, a_p)), res((1, a_p)),             # action scale, bias
            ],
            out_specs=pl.BlockSpec((tile_b, a_p), batch_map),
            compiler_params=pltpu.CompilerParams(
                dimension_semantics=("parallel",),
                vmem_limit_bytes=_vmem_limit_bytes(tile_b, d_in, h_p, a_p, cap),
            ),
        )(state,
          prepared["w1"], prepared["b1"],
          prepared["w2"], prepared["b2"],
          prepared["wm"], prepared["bm"],
          prepared["scale"], prepared["bias"])

    try:
        out = run(single_buffer_weights=True)
    except Exception:   # older jax without BlockSpec pipeline_mode / Buffered(1)
        out = run(single_buffer_weights=False)

    return out[:, :n_act]


# --------------------------------------------------------------------------- #
# Init + reference (match the PyTorch module)
# --------------------------------------------------------------------------- #
def _xavier_uniform(key, fan_in, fan_out):
    bound = jnp.sqrt(6.0 / (fan_in + fan_out))
    return jax.random.uniform(key, (fan_in, fan_out), jnp.float32, -bound, bound)


def init_params(key, num_inputs, num_actions, hidden_dim):
    k1, k2, k3 = jax.random.split(key, 3)
    return {
        "w1": _xavier_uniform(k1, num_inputs, hidden_dim),
        "b1": jnp.zeros((1, hidden_dim), jnp.float32),
        "w2": _xavier_uniform(k2, hidden_dim, hidden_dim),
        "b2": jnp.zeros((1, hidden_dim), jnp.float32),
        "wm": _xavier_uniform(k3, hidden_dim, num_actions),
        "bm": jnp.zeros((1, num_actions), jnp.float32),
    }


def reference_forward(state, params, action_scale=1.0, action_bias=0.0):
    x = jnp.maximum(state @ params["w1"] + params["b1"], 0.0)
    x = jnp.maximum(x @ params["w2"] + params["b2"], 0.0)
    return jnp.tanh(x @ params["wm"] + params["bm"]) * action_scale + action_bias


if __name__ == "__main__":
    # Small shapes consistent with the module: batch=2, num_inputs=16,
    # hidden_dim=32, num_actions=4.
    B, num_inputs, num_actions, hidden_dim = 2, 16, 4, 32

    key = jax.random.PRNGKey(0)
    k_state, k_params = jax.random.split(key)
    state = jax.random.normal(k_state, (B, num_inputs), jnp.float32)
    params = init_params(k_params, num_inputs, num_actions, hidden_dim)

    # --- action_space=None: scale=1.0, bias=0.0 ------------------------------
    prepared, dims = prepare_params(params)
    out = jax.block_until_ready(deterministic_policy_forward(state, prepared, dims))
    ref = reference_forward(state, params)
    assert out.shape == (B, num_actions)
    # bf16 MXU operands with f32 accumulation (deliberate precision choice) ->
    # bf16-level tolerance against the pure-f32 reference.
    assert jnp.allclose(out, ref, atol=3e-2, rtol=3e-2), (
        f"mismatch vs reference: max abs diff {jnp.max(jnp.abs(out - ref))}")

    # --- action_space given: per-action scale / bias vectors -----------------
    high = jnp.array([1.0, 2.0, 0.5, 3.0], jnp.float32)
    low = jnp.array([-1.0, 0.0, -0.5, -1.0], jnp.float32)
    scale, bias = (high - low) / 2.0, (high + low) / 2.0
    prepared2, dims2 = prepare_params(params, action_scale=scale, action_bias=bias)
    out2 = jax.block_until_ready(
        deterministic_policy_forward(state, prepared2, dims2))
    ref2 = reference_forward(state, params, scale, bias)
    assert jnp.allclose(out2, ref2, atol=5e-2, rtol=5e-2), (
        f"affine mismatch vs reference: max abs diff {jnp.max(jnp.abs(out2 - ref2))}")

    # TODO(synk): sample() adds clamped Gaussian noise from a stateful torch
    # RNG buffer; only the deterministic forward() is implemented here.
    print("KERNEL_OK")
</pallas_src>

<mosaic_0001>
module attributes {stable_mosaic.version = 11 : i64} {
  func.func @_policy_kernel(%arg0: i32, %arg1: memref<2x16xf32, #tpu.memory_space<vmem>>, %arg2: memref<16x128xbf16, #tpu.memory_space<vmem>>, %arg3: memref<1x128xf32, #tpu.memory_space<vmem>>, %arg4: memref<128x128xbf16, #tpu.memory_space<vmem>>, %arg5: memref<1x128xf32, #tpu.memory_space<vmem>>, %arg6: memref<128x128xbf16, #tpu.memory_space<vmem>>, %arg7: memref<1x128xf32, #tpu.memory_space<vmem>>, %arg8: memref<1x128xf32, #tpu.memory_space<vmem>>, %arg9: memref<1x128xf32, #tpu.memory_space<vmem>>, %arg10: memref<2x128xf32, #tpu.memory_space<vmem>>) attributes {dimension_semantics = [#tpu.dimension_semantics<parallel>], iteration_bounds = array<i64: 1>, scalar_prefetch = 0 : i64, scratch_operands = 0 : i64, tpu.core_type = #tpu.core_type<tc>, window_params = [{transform_indices = @transform_0, window_bounds = array<i64: 2, 16>}, {pipeline_mode = #tpu.pipeline_mode<synchronous>, transform_indices = @transform_1, window_bounds = array<i64: 16, 128>}, {pipeline_mode = #tpu.pipeline_mode<synchronous>, transform_indices = @transform_2, window_bounds = array<i64: 1, 128>}, {pipeline_mode = #tpu.pipeline_mode<synchronous>, transform_indices = @transform_3, window_bounds = array<i64: 128, 128>}, {pipeline_mode = #tpu.pipeline_mode<synchronous>, transform_indices = @transform_4, window_bounds = array<i64: 1, 128>}, {pipeline_mode = #tpu.pipeline_mode<synchronous>, transform_indices = @transform_5, window_bounds = array<i64: 128, 128>}, {pipeline_mode = #tpu.pipeline_mode<synchronous>, transform_indices = @transform_6, window_bounds = array<i64: 1, 128>}, {pipeline_mode = #tpu.pipeline_mode<synchronous>, transform_indices = @transform_7, window_bounds = array<i64: 1, 128>}, {pipeline_mode = #tpu.pipeline_mode<synchronous>, transform_indices = @transform_8, window_bounds = array<i64: 1, 128>}, {transform_indices = @transform_9, window_bounds = array<i64: 2, 128>}]} {
    %c0 = arith.constant 0 : index
    %c0_0 = arith.constant 0 : index
    %0 = vector.load %arg1[%c0, %c0_0] : memref<2x16xf32, #tpu.memory_space<vmem>>, vector<2x16xf32>
    %1 = arith.truncf %0 : vector<2x16xf32> to vector<2x16xbf16>
    %c0_1 = arith.constant 0 : index
    %c0_2 = arith.constant 0 : index
    %2 = vector.load %arg2[%c0_1, %c0_2] : memref<16x128xbf16, #tpu.memory_space<vmem>>, vector<16x128xbf16>
    %cst = arith.constant dense<0.000000e+00> : vector<2x128xf32>
    %3 = tpu.matmul %1, %2, %cst {dimension_numbers = #tpu.dot_dimension_numbers<[1], [0], [0], [1], [0, 0, 1, 1], [], []>} : vector<2x16xbf16>, vector<16x128xbf16>, vector<2x128xf32> -> vector<2x128xf32>
    %c0_3 = arith.constant 0 : index
    %c0_4 = arith.constant 0 : index
    %4 = vector.load %arg3[%c0_3, %c0_4] : memref<1x128xf32, #tpu.memory_space<vmem>>, vector<1x128xf32>
    %5 = vector.broadcast %4 : vector<1x128xf32> to vector<2x128xf32>
    %6 = arith.addf %3, %5 : vector<2x128xf32>
    %cst_5 = arith.constant 0.000000e+00 : f32
    %7 = vector.broadcast %cst_5 : f32 to vector<2x128xf32>
    %8 = arith.maximumf %6, %7 : vector<2x128xf32>
    %9 = arith.truncf %8 : vector<2x128xf32> to vector<2x128xbf16>
    %c0_6 = arith.constant 0 : index
    %c0_7 = arith.constant 0 : index
    %10 = vector.load %arg4[%c0_6, %c0_7] : memref<128x128xbf16, #tpu.memory_space<vmem>>, vector<128x128xbf16>
    %cst_8 = arith.constant dense<0.000000e+00> : vector<2x128xf32>
    %11 = tpu.matmul %9, %10, %cst_8 {dimension_numbers = #tpu.dot_dimension_numbers<[1], [0], [0], [1], [0, 0, 1, 1], [], []>} : vector<2x128xbf16>, vector<128x128xbf16>, vector<2x128xf32> -> vector<2x128xf32>
    %c0_9 = arith.constant 0 : index
    %c0_10 = arith.constant 0 : index
    %12 = vector.load %arg5[%c0_9, %c0_10] : memref<1x128xf32, #tpu.memory_space<vmem>>, vector<1x128xf32>
    %13 = vector.broadcast %12 : vector<1x128xf32> to vector<2x128xf32>
    %14 = arith.addf %11, %13 : vector<2x128xf32>
    %cst_11 = arith.constant 0.000000e+00 : f32
    %15 = vector.broadcast %cst_11 : f32 to vector<2x128xf32>
    %16 = arith.maximumf %14, %15 : vector<2x128xf32>
    %17 = arith.truncf %16 : vector<2x128xf32> to vector<2x128xbf16>
    %c0_12 = arith.constant 0 : index
    %c0_13 = arith.constant 0 : index
    %18 = vector.load %arg6[%c0_12, %c0_13] : memref<128x128xbf16, #tpu.memory_space<vmem>>, vector<128x128xbf16>
    %cst_14 = arith.constant dense<0.000000e+00> : vector<2x128xf32>
    %19 = tpu.matmul %17, %18, %cst_14 {dimension_numbers = #tpu.dot_dimension_numbers<[1], [0], [0], [1], [0, 0, 1, 1], [], []>} : vector<2x128xbf16>, vector<128x128xbf16>, vector<2x128xf32> -> vector<2x128xf32>
    %c0_15 = arith.constant 0 : index
    %c0_16 = arith.constant 0 : index
    %20 = vector.load %arg7[%c0_15, %c0_16] : memref<1x128xf32, #tpu.memory_space<vmem>>, vector<1x128xf32>
    %21 = vector.broadcast %20 : vector<1x128xf32> to vector<2x128xf32>
    %22 = arith.addf %19, %21 : vector<2x128xf32>
    %23 = math.tanh %22 : vector<2x128xf32>
    %c0_17 = arith.constant 0 : index
    %c0_18 = arith.constant 0 : index
    %24 = vector.load %arg8[%c0_17, %c0_18] : memref<1x128xf32, #tpu.memory_space<vmem>>, vector<1x128xf32>
    %25 = vector.broadcast %24 : vector<1x128xf32> to vector<2x128xf32>
    %26 = arith.mulf %23, %25 : vector<2x128xf32>
    %c0_19 = arith.constant 0 : index
    %c0_20 = arith.constant 0 : index
    %27 = vector.load %arg9[%c0_19, %c0_20] : memref<1x128xf32, #tpu.memory_space<vmem>>, vector<1x128xf32>
    %28 = vector.broadcast %27 : vector<1x128xf32> to vector<2x128xf32>
    %29 = arith.addf %26, %28 : vector<2x128xf32>
    %c0_21 = arith.constant 0 : index
    %c0_22 = arith.constant 0 : index
    %30 = vector.load %arg10[%c0_21, %c0_22] : memref<2x128xf32, #tpu.memory_space<vmem>>, vector<2x128xf32>
    tpu.vector_store %arg10[%c0_21, %c0_22], %29 {strides = array<i32>} : memref<2x128xf32, #tpu.memory_space<vmem>>, vector<2x128xf32>,
    return
  }
  func.func @transform_0(%arg0: i32) -> (i32, i32) {
    %c0_i32 = arith.constant 0 : i32
    %c0_i32_0 = arith.constant 0 : i32
    return %arg0, %c0_i32 : i32, i32
  }
  func.func @transform_1(%arg0: i32) -> (i32, i32) {
    %c0_i32 = arith.constant 0 : i32
    %c0_i32_0 = arith.constant 0 : i32
    %c0_i32_1 = arith.constant 0 : i32
    return %c0_i32, %c0_i32_0 : i32, i32
  }
  func.func @transform_2(%arg0: i32) -> (i32, i32) {
    %c0_i32 = arith.constant 0 : i32
    %c0_i32_0 = arith.constant 0 : i32
    %c0_i32_1 = arith.constant 0 : i32
    return %c0_i32, %c0_i32_0 : i32, i32
  }
  func.func @transform_3(%arg0: i32) -> (i32, i32) {
    %c0_i32 = arith.constant 0 : i32
    %c0_i32_0 = arith.constant 0 : i32
    %c0_i32_1 = arith.constant 0 : i32
    return %c0_i32, %c0_i32_0 : i32, i32
  }
  func.func @transform_4(%arg0: i32) -> (i32, i32) {
    %c0_i32 = arith.constant 0 : i32
    %c0_i32_0 = arith.constant 0 : i32
    %c0_i32_1 = arith.constant 0 : i32
    return %c0_i32, %c0_i32_0 : i32, i32
  }
  func.func @transform_5(%arg0: i32) -> (i32, i32) {
    %c0_i32 = arith.constant 0 : i32
    %c0_i32_0 = arith.constant 0 : i32
    %c0_i32_1 = arith.constant 0 : i32
    return %c0_i32, %c0_i32_0 : i32, i32
  }
  func.func @transform_6(%arg0: i32) -> (i32, i32) {
    %c0_i32 = arith.constant 0 : i32
    %c0_i32_0 = arith.constant 0 : i32
    %c0_i32_1 = arith.constant 0 : i32
    return %c0_i32, %c0_i32_0 : i32, i32
  }
  func.func @transform_7(%arg0: i32) -> (i32, i32) {
    %c0_i32 = arith.constant 0 : i32
    %c0_i32_0 = arith.constant 0 : i32
    %c0_i32_1 = arith.constant 0 : i32
    return %c0_i32, %c0_i32_0 : i32, i32
  }
  func.func @transform_8(%arg0: i32) -> (i32, i32) {
    %c0_i32 = arith.constant 0 : i32
    %c0_i32_0 = arith.constant 0 : i32
    %c0_i32_1 = arith.constant 0 : i32
    return %c0_i32, %c0_i32_0 : i32, i32
  }
  func.func @transform_9(%arg0: i32) -> (i32, i32) {
    %c0_i32 = arith.constant 0 : i32
    %c0_i32_0 = arith.constant 0 : i32
    return %arg0, %c0_i32 : i32, i32
  }
}

module attributes {stable_mosaic.version = 11 : i64} {
  func.func @_policy_kernel(%arg0: i32, %arg1: memref<2x16xf32, #tpu.memory_space<vmem>>, %arg2: memref<16x128xbf16, #tpu.memory_space<vmem>>, %arg3: memref<1x128xf32, #tpu.memory_space<vmem>>, %arg4: memref<128x128xbf16, #tpu.memory_space<vmem>>, %arg5: memref<1x128xf32, #tpu.memory_space<vmem>>, %arg6: memref<128x128xbf16, #tpu.memory_space<vmem>>, %arg7: memref<1x128xf32, #tpu.memory_space<vmem>>, %arg8: memref<1x128xf32, #tpu.memory_space<vmem>>, %arg9: memref<1x128xf32, #tpu.memory_space<vmem>>, %arg10: memref<2x128xf32, #tpu.memory_space<vmem>>) attributes {dimension_semantics = [#tpu.dimension_semantics<parallel>], iteration_bounds = array<i64: 1>, scalar_prefetch = 0 : i64, scratch_operands = 0 : i64, tpu.core_type = #tpu.core_type<tc>, window_params = [{transform_indices = @transform_0, window_bounds = array<i64: 2, 16>}, {pipeline_mode = #tpu.pipeline_mode<synchronous>, transform_indices = @transform_1, window_bounds = array<i64: 16, 128>}, {pipeline_mode = #tpu.pipeline_mode<synchronous>, transform_indices = @transform_2, window_bounds = array<i64: 1, 128>}, {pipeline_mode = #tpu.pipeline_mode<synchronous>, transform_indices = @transform_3, window_bounds = array<i64: 128, 128>}, {pipeline_mode = #tpu.pipeline_mode<synchronous>, transform_indices = @transform_4, window_bounds = array<i64: 1, 128>}, {pipeline_mode = #tpu.pipeline_mode<synchronous>, transform_indices = @transform_5, window_bounds = array<i64: 128, 128>}, {pipeline_mode = #tpu.pipeline_mode<synchronous>, transform_indices = @transform_6, window_bounds = array<i64: 1, 128>}, {pipeline_mode = #tpu.pipeline_mode<synchronous>, transform_indices = @transform_7, window_bounds = array<i64: 1, 128>}, {pipeline_mode = #tpu.pipeline_mode<synchronous>, transform_indices = @transform_8, window_bounds = array<i64: 1, 128>}, {transform_indices = @transform_9, window_bounds = array<i64: 2, 128>}]} {
    %c0 = arith.constant 0 : index
    %c0_0 = arith.constant 0 : index
    %0 = vector.load %arg1[%c0, %c0_0] : memref<2x16xf32, #tpu.memory_space<vmem>>, vector<2x16xf32>
    %1 = arith.truncf %0 : vector<2x16xf32> to vector<2x16xbf16>
    %c0_1 = arith.constant 0 : index
    %c0_2 = arith.constant 0 : index
    %2 = vector.load %arg2[%c0_1, %c0_2] : memref<16x128xbf16, #tpu.memory_space<vmem>>, vector<16x128xbf16>
    %cst = arith.constant dense<0.000000e+00> : vector<2x128xf32>
    %3 = tpu.matmul %1, %2, %cst {dimension_numbers = #tpu.dot_dimension_numbers<[1], [0], [0], [1], [0, 0, 1, 1], [], []>} : vector<2x16xbf16>, vector<16x128xbf16>, vector<2x128xf32> -> vector<2x128xf32>
    %c0_3 = arith.constant 0 : index
    %c0_4 = arith.constant 0 : index
    %4 = vector.load %arg3[%c0_3, %c0_4] : memref<1x128xf32, #tpu.memory_space<vmem>>, vector<1x128xf32>
    %5 = vector.broadcast %4 : vector<1x128xf32> to vector<2x128xf32>
    %6 = arith.addf %3, %5 : vector<2x128xf32>
    %cst_5 = arith.constant 0.000000e+00 : f32
    %7 = vector.broadcast %cst_5 : f32 to vector<2x128xf32>
    %8 = arith.maximumf %6, %7 : vector<2x128xf32>
    %9 = arith.truncf %8 : vector<2x128xf32> to vector<2x128xbf16>
    %c0_6 = arith.constant 0 : index
    %c0_7 = arith.constant 0 : index
    %10 = vector.load %arg4[%c0_6, %c0_7] : memref<128x128xbf16, #tpu.memory_space<vmem>>, vector<128x128xbf16>
    %cst_8 = arith.constant dense<0.000000e+00> : vector<2x128xf32>
    %11 = tpu.matmul %9, %10, %cst_8 {dimension_numbers = #tpu.dot_dimension_numbers<[1], [0], [0], [1], [0, 0, 1, 1], [], []>} : vector<2x128xbf16>, vector<128x128xbf16>, vector<2x128xf32> -> vector<2x128xf32>
    %c0_9 = arith.constant 0 : index
    %c0_10 = arith.constant 0 : index
    %12 = vector.load %arg5[%c0_9, %c0_10] : memref<1x128xf32, #tpu.memory_space<vmem>>, vector<1x128xf32>
    %13 = vector.broadcast %12 : vector<1x128xf32> to vector<2x128xf32>
    %14 = arith.addf %11, %13 : vector<2x128xf32>
    %cst_11 = arith.constant 0.000000e+00 : f32
    %15 = vector.broadcast %cst_11 : f32 to vector<2x128xf32>
    %16 = arith.maximumf %14, %15 : vector<2x128xf32>
    %17 = arith.truncf %16 : vector<2x128xf32> to vector<2x128xbf16>
    %c0_12 = arith.constant 0 : index
    %c0_13 = arith.constant 0 : index
    %18 = vector.load %arg6[%c0_12, %c0_13] : memref<128x128xbf16, #tpu.memory_space<vmem>>, vector<128x128xbf16>
    %cst_14 = arith.constant dense<0.000000e+00> : vector<2x128xf32>
    %19 = tpu.matmul %17, %18, %cst_14 {dimension_numbers = #tpu.dot_dimension_numbers<[1], [0], [0], [1], [0, 0, 1, 1], [], []>} : vector<2x128xbf16>, vector<128x128xbf16>, vector<2x128xf32> -> vector<2x128xf32>
    %c0_15 = arith.constant 0 : index
    %c0_16 = arith.constant 0 : index
    %20 = vector.load %arg7[%c0_15, %c0_16] : memref<1x128xf32, #tpu.memory_space<vmem>>, vector<1x128xf32>
    %21 = vector.broadcast %20 : vector<1x128xf32> to vector<2x128xf32>
    %22 = arith.addf %19, %21 : vector<2x128xf32>
    %23 = math.tanh %22 : vector<2x128xf32>
    %c0_17 = arith.constant 0 : index
    %c0_18 = arith.constant 0 : index
    %24 = vector.load %arg8[%c0_17, %c0_18] : memref<1x128xf32, #tpu.memory_space<vmem>>, vector<1x128xf32>
    %25 = vector.broadcast %24 : vector<1x128xf32> to vector<2x128xf32>
    %26 = arith.mulf %23, %25 : vector<2x128xf32>
    %c0_19 = arith.constant 0 : index
    %c0_20 = arith.constant 0 : index
    %27 = vector.load %arg9[%c0_19, %c0_20] : memref<1x128xf32, #tpu.memory_space<vmem>>, vector<1x128xf32>
    %28 = vector.broadcast %27 : vector<1x128xf32> to vector<2x128xf32>
    %29 = arith.addf %26, %28 : vector<2x128xf32>
    %c0_21 = arith.constant 0 : index
    %c0_22 = arith.constant 0 : index
    %30 = vector.load %arg10[%c0_21, %c0_22] : memref<2x128xf32, #tpu.memory_space<vmem>>, vector<2x128xf32>
    tpu.vector_store %arg10[%c0_21, %c0_22], %29 {strides = array<i32>} : memref<2x128xf32, #tpu.memory_space<vmem>>, vector<2x128xf32>,
    return
  }
  func.func @transform_0(%arg0: i32) -> (i32, i32) {
    %c0_i32 = arith.constant 0 : i32
    %c0_i32_0 = arith.constant 0 : i32
    return %arg0, %c0_i32 : i32, i32
  }
  func.func @transform_1(%arg0: i32) -> (i32, i32) {
    %c0_i32 = arith.constant 0 : i32
    %c0_i32_0 = arith.constant 0 : i32
    %c0_i32_1 = arith.constant 0 : i32
    return %c0_i32, %c0_i32_0 : i32, i32
  }
  func.func @transform_2(%arg0: i32) -> (i32, i32) {
    %c0_i32 = arith.constant 0 : i32
    %c0_i32_0 = arith.constant 0 : i32
    %c0_i32_1 = arith.constant 0 : i32
    return %c0_i32, %c0_i32_0 : i32, i32
  }
  func.func @transform_3(%arg0: i32) -> (i32, i32) {
    %c0_i32 = arith.constant 0 : i32
    %c0_i32_0 = arith.constant 0 : i32
    %c0_i32_1 = arith.constant 0 : i32
    return %c0_i32, %c0_i32_0 : i32, i32
  }
  func.func @transform_4(%arg0: i32) -> (i32, i32) {
    %c0_i32 = arith.constant 0 : i32
    %c0_i32_0 = arith.constant 0 : i32
    %c0_i32_1 = arith.constant 0 : i32
    return %c0_i32, %c0_i32_0 : i32, i32
  }
  func.func @transform_5(%arg0: i32) -> (i32, i32) {
    %c0_i32 = arith.constant 0 : i32
    %c0_i32_0 = arith.constant 0 : i32
    %c0_i32_1 = arith.constant 0 : i32
    return %c0_i32, %c0_i32_0 : i32, i32
  }
  func.func @transform_6(%arg0: i32) -> (i32, i32) {
    %c0_i32 = arith.constant 0 : i32
    %c0_i32_0 = arith.constant 0 : i32
    %c0_i32_1 = arith.constant 0 : i32
    return %c0_i32, %c0_i32_0 : i32, i32
  }
  func.func @transform_7(%arg0: i32) -> (i32, i32) {
    %c0_i32 = arith.constant 0 : i32
    %c0_i32_0 = arith.constant 0 : i32
    %c0_i32_1 = arith.constant 0 : i32
    return %c0_i32, %c0_i32_0 : i32, i32
  }
  func.func @transform_8(%arg0: i32) -> (i32, i32) {
    %c0_i32 = arith.constant 0 : i32
    %c0_i32_0 = arith.constant 0 : i32
    %c0_i32_1 = arith.constant 0 : i32
    return %c0_i32, %c0_i32_0 : i32, i32
  }
  func.func @transform_9(%arg0: i32) -> (i32, i32) {
    %c0_i32 = arith.constant 0 : i32
    %c0_i32_0 = arith.constant 0 : i32
    return %arg0, %c0_i32 : i32, i32
  }
}

</mosaic_0001>

<bundles_post_ra>
// kernel: tpu_custom_call.1
= control target key start
LH: loop header
LB: loop body
LE: loop exit
PB: predicated region body
PF: predicated region fallthrough
CT: control target
= control target key end

     0   :  { %14 = vsyncpa [#allocation3], 0  ;;  %s752_s0 = inlined_call_operand.hbm [shape: f32[2,16], index: 0, kind: input, shape index: {}]   ;;  %s753_s1 = inlined_call_operand.hbm [shape: bf16[16,128], index: 1, kind: input, shape index: {}]   ;;  %s754_s2 = inlined_call_operand.vmem [shape: f32[1,128], index: 2, kind: input, shape index: {}]   ;;  %s755_s3 = inlined_call_operand.hbm [shape: bf16[128,128], index: 3, kind: input, shape index: {}]   ;;  %s756_s4 = inlined_call_operand.vmem [shape: f32[1,128], index: 4, kind: input, shape index: {}]   ;;  %s757_s5 = inlined_call_operand.hbm [shape: bf16[128,128], index: 5, kind: input, shape index: {}]   ;;  %s758_s6 = inlined_call_operand.vmem [shape: f32[1,128], index: 6, kind: input, shape index: {}]   ;;  %s759_s7 = inlined_call_operand.vmem [shape: f32[1,128], index: 7, kind: input, shape index: {}]   ;;  %s760_s8 = inlined_call_operand.vmem [shape: f32[1,128], index: 8, kind: input, shape index: {}]   ;;  %s761_s9 = inlined_call_operand.hbm [shape: f32[2,128], index: 9, kind: output, shape index: {}]  }
   0x1   :  { %15 = vsyncpa [#allocation6], 0 }
   0x2   :  { %16 = vsyncpa [#allocation9], 0 }
   0x3   :  { %17 = vsyncpa [#allocation4], 0  ;;  %s634_s30 = smov [#allocation5]  }
   0x4   :  { %s33_s10 = sshll.u32 %s634_s30, 4  ;;  %s34_s10 = int_to_ptr.vmem [resolvable:$true] %s33_s10 }
   0x5   :  { %s534_s11 = scalar_lea.vmem %s34_s10, 128  ;;  %p539_p1 = scmp.lt.s32.totalorder %s34_s10, %s34_s10 }
   0x6   :  { %p535_p0 = scmp.ne.s32.totalorder %s34_s10, %s534_s11  ;;  %p540_p2 = scmp.lt.s32.totalorder %s534_s11, %s534_s11 }
   0x8   :  { %p541_p3 = por %p540_p2, %p539_p1 }
   0xa   :  { %p542_p4 = pnand %p541_p3, %p535_p0 }
   0xc   :  { %545 = shalt.err (!%p542_p4)
}
   0xd   :  { %s635_s12 = smov 64   ;;  %s636_s13 = smov 4  }
   0xe   :  { %39 = dma.hbm_to_vmem [thread:$0]  %s753_s1, 128, %s34_s10, [#allocation6], %s635_s12, %s635_s12, %s636_s13  }
   0xf   :  { %s637_s16 = smov [#allocation2]   ;;  %s638_s18 = smov [#allocation7]  }
  0x10   :  { %s24_s17 = sshll.u32 %s637_s16, 4  ;;  %s47_s19 = sshll.u32 %s638_s18, 4  ;;  %s25_s17 = int_to_ptr.vmem [resolvable:$true] %s24_s17  ;;  %s48_s19 = int_to_ptr.vmem [resolvable:$true] %s47_s19 }
  0x11   :  { %s554_s20 = scalar_lea.vmem %s25_s17, 32  ;;  %p559_p6 = scmp.lt.s32.totalorder %s25_s17, %s25_s17 }
  0x12   :  { %p555_p5 = scmp.ne.s32.totalorder %s25_s17, %s554_s20  ;;  %p560_p7 = scmp.lt.s32.totalorder %s554_s20, %s554_s20 }
  0x14   :  { %p561_p8 = por %p560_p7, %p559_p6 }
  0x16   :  { %p562_p9 = pnand %p561_p8, %p555_p5 }
  0x18   :  { %565 = shalt.err (!%p562_p9)
}
  0x19   :  { %27 = dma.hbm_to_vmem [thread:$0]  %s752_s0, 32, %s25_s17, [#allocation3]  }
  0x1a   :  { %s574_s23 = scalar_lea.vmem %s48_s19, 1024  ;;  %p579_p11 = scmp.lt.s32.totalorder %s48_s19, %s48_s19 }
  0x1b   :  { %p575_p10 = scmp.ne.s32.totalorder %s48_s19, %s574_s23  ;;  %p580_p12 = scmp.lt.s32.totalorder %s574_s23, %s574_s23 }
  0x1d   :  { %p581_p13 = por %p580_p12, %p579_p11 }
  0x1f   :  { %p582_p0 = pnand %p581_p13, %p575_p10 }
  0x21   :  { %585 = shalt.err (!%p582_p0)
}
  0x22   :  { %53 = dma.hbm_to_vmem [thread:$0]  %s755_s3, 1024, %s48_s19, [#allocation6], %s635_s12, %s635_s12, %s636_s13  }
  0x23   :  { %s639_s25 = smov [#allocation8]  }
  0x24   :  { %s61_s26 = sshll.u32 %s639_s25, 4  ;;  %s62_s26 = int_to_ptr.vmem [resolvable:$true] %s61_s26 }
  0x25   :  { %s594_s27 = scalar_lea.vmem %s62_s26, 1024  ;;  %p599_p2 = scmp.lt.s32.totalorder %s62_s26, %s62_s26 }
  0x26   :  { %p595_p1 = scmp.ne.s32.totalorder %s62_s26, %s594_s27  ;;  %p600_p3 = scmp.lt.s32.totalorder %s594_s27, %s594_s27 }
  0x28   :  { %p601_p4 = por %p600_p3, %p599_p2 }
  0x2a   :  { %p602_p5 = pnand %p601_p4, %p595_p1 }
  0x2c   :  { %605 = shalt.err (!%p602_p5)
}
  0x2d   :  { %67 = dma.hbm_to_vmem [thread:$0]  %s757_s5, 1024, %s62_s26, [#allocation9], %s635_s12, %s635_s12, %s636_s13  }
  0x2e   :  { %626 = dma.done.wait [#allocation3], 32  }
  0x2f   :  { %627 = vsyncadd [#allocation3], 4294967264 }
  0x30   :  { %628 = dma.done.wait [#allocation6], 1152  }
  0x31   :  { %629 = vsyncadd [#allocation6], 4294966144 }
  0x32   :  { %630 = dma.done.wait [#allocation9], 1024  }
  0x33   :  { %631 = vsyncadd [#allocation9], 4294966272  ;;  %v640_v0 = vmov 0.0   ;;  %vm641_vm0 = vmmov 0   ;;  %v507_v1 = vld [vmem:[#allocation5] sm:$0xff]   ;;  %vm104_vm1 = vcmask 130048  }
  0x34   :  { %452 = vmatprep.subr.bf16.mxu0 %v640_v0  ;;  %454 = vmatprep.mubr.msk.bf16.mxu0 %vm641_vm0, %v640_v0  ;;  %v87_v2 = vld [vmem:[#allocation2] sm:$0x3]  ;;  %v508_v4 = vld [vmem:[#allocation7 + $0x38] sm:$0xff]   ;;  %v510_v6 = vld [vmem:[#allocation7 + $0x28] sm:$0xff]   ;;  %s642_s14 = smov [#allocation10]  }
  0x35   :  { %458 = vmatprep.subr.bf16.mxu1 %v640_v0  ;;  %474 = vmatprep.mubr.msk.bf16.mxu1 %vm641_vm0, %v640_v0  ;;  %v88_v3 = vpack.c.bf16 %v87_v2, %v87_v2  ;;  %v509_v5 = vld [vmem:[#allocation7 + $0x30] sm:$0xff]   ;;  %v511_v7 = vld [vmem:[#allocation7 + $0x20] sm:$0xff]   ;;  %v512_v8 = vld [vmem:[#allocation7 + $0x18] sm:$0xff]   ;;  %s398_s15 = sshll.u32 %s642_s14, 4  ;;  %s399_s15 = int_to_ptr.vmem [resolvable:$true] %s398_s15 }
  0x36   :  { %453 = vmatpush3.bf16.msra.mxu0 %v507_v1  ;;  %459 = vmatpush3.bf16.msra.mxu1 %v508_v4  ;;  %v513_v9 = vld [vmem:[#allocation7 + $0x10] sm:$0xff]   ;;  %v514_v10 = vld [vmem:[#allocation7 + $0x8] sm:$0xff]   ;;  %v515_v11 = vld [vmem:[#allocation7] sm:$0xff]   ;;  %p611_p7 = scmp.lt.s32.totalorder %s399_s15, %s399_s15 }
  0x37   :  { %478 = vmatprep.subr.bf16.mxu0 %v640_v0  ;;  %460 = vmatprep.subr.bf16.mxu1 %v640_v0  ;;  %v516_v12 = vld [vmem:[#allocation8 + $0x38] sm:$0xff]   ;;  %v517_v13 = vld [vmem:[#allocation8 + $0x30] sm:$0xff]   ;;  %v518_v14 = vld [vmem:[#allocation8 + $0x28] sm:$0xff]  }
  0x38   :  { %v519_v15 = vld [vmem:[#allocation8 + $0x20] sm:$0xff]   ;;  %v520_v16 = vld [vmem:[#allocation8 + $0x18] sm:$0xff]   ;;  %v521_v17 = vld [vmem:[#allocation8 + $0x10] sm:$0xff]  }
  0x39   :  { %455 = vmatmul.mubr.msk.bf16.vlgmr.msra.gmra.mxu0 %vm104_vm1, %v88_v3  ;;  %v409_v18 = vld [vmem:[%s754_s2] ss:$0 sm:$0xff]  ;;  %v522_v26 = vld [vmem:[#allocation8 + $0x8] sm:$0xff]   ;;  %v523_v27 = vld [vmem:[#allocation8] sm:$0xff]  }
  0x3a   :  { %494 = vmatprep.mubr.msk.bf16.mxu0 %vm641_vm0, %v640_v0  ;;  %461 = vmatpush3.bf16.msra.mxu1 %v509_v5  ;;  %v412_v28 = vld [vmem:[%s756_s4] ss:$0 sm:$0xff] }
  0x3b   :  { %462 = vmatprep.subr.bf16.mxu1 %v640_v0  ;;  %479 = vmatpush3.bf16.msra.mxu0 %v516_v12  ;;  %v421_v36 = vld [vmem:[%s758_s6] ss:$0 sm:$0xff]  ;;  %s606_s6 = scalar_lea.vmem %s399_s15, 32 }
  0x3c   :  { %480 = vmatprep.subr.bf16.mxu0 %v640_v0  ;;  %v430_v42 = vld [vmem:[%s759_s7] ss:$0 sm:$0xff]  ;;  %p607_p6 = scmp.ne.s32.totalorder %s399_s15, %s606_s6  ;;  %p612_p8 = scmp.lt.s32.totalorder %s606_s6, %s606_s6 }
  0x3d   :  { %v431_v44 = vld [vmem:[%s760_s8] ss:$0 sm:$0xff] }
  0x3e   :  { %463 = vmatpush3.bf16.msra.mxu1 %v510_v6  ;;  %p613_p9 = por %p612_p8, %p611_p7 }
  0x3f   :  { %464 = vmatprep.subr.bf16.mxu1 %v640_v0  ;;  %481 = vmatpush3.bf16.msra.mxu0 %v517_v13 }
  0x40   :  { %482 = vmatprep.subr.bf16.mxu0 %v640_v0  ;;  %p614_p10 = pnand %p613_p9, %p607_p6 }
  0x42   :  { %465 = vmatpush3.bf16.msra.mxu1 %v511_v7 }
  0x43   :  { %466 = vmatprep.subr.bf16.mxu1 %v640_v0  ;;  %483 = vmatpush3.bf16.msra.mxu0 %v518_v14 }
  0x44   :  { %484 = vmatprep.subr.bf16.mxu0 %v640_v0 }
  0x46   :  { %467 = vmatpush3.bf16.msra.mxu1 %v512_v8 }
  0x47   :  { %468 = vmatprep.subr.bf16.mxu1 %v640_v0  ;;  %485 = vmatpush3.bf16.msra.mxu0 %v519_v15 }
  0x48   :  { %486 = vmatprep.subr.bf16.mxu0 %v640_v0 }
  0x4a   :  { %469 = vmatpush3.bf16.msra.mxu1 %v513_v9 }
  0x4b   :  { %470 = vmatprep.subr.bf16.mxu1 %v640_v0  ;;  %487 = vmatpush3.bf16.msra.mxu0 %v520_v16 }
  0x4c   :  { %488 = vmatprep.subr.bf16.mxu0 %v640_v0 }
  0x4e   :  { %471 = vmatpush3.bf16.msra.mxu1 %v514_v10 }
  0x4f   :  { %472 = vmatprep.subr.bf16.mxu1 %v640_v0  ;;  %489 = vmatpush3.bf16.msra.mxu0 %v521_v17 }
  0x50   :  { %490 = vmatprep.subr.bf16.mxu0 %v640_v0 }
  0x52   :  { %473 = vmatpush3.bf16.msra.mxu1 %v515_v11 }
  0x53   :  { %491 = vmatpush3.bf16.msra.mxu0 %v522_v26 }
  0x54   :  { %492 = vmatprep.subr.bf16.mxu0 %v640_v0 }
  0x57   :  { %493 = vmatpush3.bf16.msra.mxu0 %v523_v27 }
  0xf9   :  { %v142_v19 = vpop.f32.mrf.mxu0 }
  0xfa   :  { %v143_v20 = vadd.f32 %v409_v18, %v142_v19 }
  0xfb   :  { %v456_v21 = vpop.f32.mrf.mxu0 }
  0xfc   :  { %v148_v22 = vmax.f32 %v143_v20, 0.0 }
  0xfd   :  { %v145_v23 = vpop.f32.mrf.mxu0 }
  0xfe   :  { %v149_v24 = vpack.c.bf16 %v148_v22, %v148_v22 }
  0xff   :  { %v457_v25 = vpop.f32.mrf.mxu0 }
 0x100   :  { %475 = vmatmul.mubr.bf16.vlgmr.msra.gmra.mxu1 %v149_v24 }
 0x1c0   :  { %v255_v29 = vpop.f32.mrf.mxu1 }
 0x1c1   :  { %v256_v30 = vadd.f32 %v412_v28, %v255_v29 }
 0x1c2   :  { %v476_v31 = vpop.f32.mrf.mxu1 }
 0x1c3   :  { %v261_v32 = vmax.f32 %v256_v30, 0.0 }
 0x1c4   :  { %v258_v33 = vpop.f32.mrf.mxu1 }
 0x1c5   :  { %v262_v34 = vpack.c.bf16 %v261_v32, %v261_v32 }
 0x1c6   :  { %v477_v35 = vpop.f32.mrf.mxu1 }
 0x1c7   :  { %495 = vmatmul.mubr.bf16.vlgmr.msra.gmra.mxu0 %v262_v34 }
 0x287   :  { %v368_v37 = vpop.f32.mrf.mxu0 }
 0x288   :  { %v369_v38 = vadd.f32 %v421_v36, %v368_v37 }
 0x289   :  { %v496_v39 = vpop.f32.mrf.mxu0 }
 0x28a   :  { %524 = vtanh.f32 %v369_v38 }
 0x28b   :  { %v371_v40 = vpop.f32.mrf.mxu0 }
 0x28d   :  { %v497_v41 = vpop.f32.mrf.mxu0 }
 0x297   :  { %v525_v43 = vpop.eup %524 }
 0x298   :  { %v382_v45 = vmul.f32 %v525_v43, %v430_v42 }
 0x29a   :  { %v390_v46 = vadd.f32 %v431_v44, %v382_v45 }
 0x29c   :  { %391 = vst [vmem:[#allocation10] sm:$0x3] %v390_v46 }
 0x29d   :  { %617 = shalt.err (!%p614_p10)
}
 0x29e   :  { %401 = dma.vmem_to_hbm [thread:$0]  %s399_s15, 32, %s761_s9, [#allocation4]  }
 0x29f   :  { %632 = dma.done.wait [#allocation4], 32  }
 0x2a0   :  { %633 = vsyncadd [#allocation4], 4294967264 }
 0x2a1   :  { %405 = vsyncpa [#allocation3], 1 }
 0x2a2   :  { %406 = vsyncpa [#allocation6], 1 }
 0x2a3   :  { %407 = vsyncpa [#allocation9], 1 }
 0x2a4   :  { %408 = vsyncpa [#allocation4], 1 }

// kernel: tpu_custom_call.1
= control target key start
LH: loop header
LB: loop body
LE: loop exit
PB: predicated region body
PF: predicated region fallthrough
CT: control target
= control target key end

     0   :  { %14 = vsyncpa [#allocation3], 0  ;;  %s752_s0 = inlined_call_operand.hbm [shape: f32[2,16], index: 0, kind: input, shape index: {}]   ;;  %s753_s1 = inlined_call_operand.hbm [shape: bf16[16,128], index: 1, kind: input, shape index: {}]   ;;  %s754_s2 = inlined_call_operand.vmem [shape: f32[1,128], index: 2, kind: input, shape index: {}]   ;;  %s755_s3 = inlined_call_operand.hbm [shape: bf16[128,128], index: 3, kind: input, shape index: {}]   ;;  %s756_s4 = inlined_call_operand.vmem [shape: f32[1,128], index: 4, kind: input, shape index: {}]   ;;  %s757_s5 = inlined_call_operand.hbm [shape: bf16[128,128], index: 5, kind: input, shape index: {}]   ;;  %s758_s6 = inlined_call_operand.vmem [shape: f32[1,128], index: 6, kind: input, shape index: {}]   ;;  %s759_s7 = inlined_call_operand.vmem [shape: f32[1,128], index: 7, kind: input, shape index: {}]   ;;  %s760_s8 = inlined_call_operand.vmem [shape: f32[1,128], index: 8, kind: input, shape index: {}]   ;;  %s761_s9 = inlined_call_operand.hbm [shape: f32[2,128], index: 9, kind: output, shape index: {}]  }
   0x1   :  { %15 = vsyncpa [#allocation6], 0 }
   0x2   :  { %16 = vsyncpa [#allocation9], 0 }
   0x3   :  { %17 = vsyncpa [#allocation4], 0  ;;  %s634_s30 = smov [#allocation5]  }
   0x4   :  { %s33_s10 = sshll.u32 %s634_s30, 4  ;;  %s34_s10 = int_to_ptr.vmem [resolvable:$true] %s33_s10 }
   0x5   :  { %s534_s11 = scalar_lea.vmem %s34_s10, 128  ;;  %p539_p1 = scmp.lt.s32.totalorder %s34_s10, %s34_s10 }
   0x6   :  { %p535_p0 = scmp.ne.s32.totalorder %s34_s10, %s534_s11  ;;  %p540_p2 = scmp.lt.s32.totalorder %s534_s11, %s534_s11 }
   0x8   :  { %p541_p3 = por %p540_p2, %p539_p1 }
   0xa   :  { %p542_p4 = pnand %p541_p3, %p535_p0 }
   0xc   :  { %545 = shalt.err (!%p542_p4)
}
   0xd   :  { %s635_s12 = smov 64   ;;  %s636_s13 = smov 4  }
   0xe   :  { %39 = dma.hbm_to_vmem [thread:$0]  %s753_s1, 128, %s34_s10, [#allocation6], %s635_s12, %s635_s12, %s636_s13  }
   0xf   :  { %s637_s16 = smov [#allocation2]   ;;  %s638_s18 = smov [#allocation7]  }
  0x10   :  { %s24_s17 = sshll.u32 %s637_s16, 4  ;;  %s47_s19 = sshll.u32 %s638_s18, 4  ;;  %s25_s17 = int_to_ptr.vmem [resolvable:$true] %s24_s17  ;;  %s48_s19 = int_to_ptr.vmem [resolvable:$true] %s47_s19 }
  0x11   :  { %s554_s20 = scalar_lea.vmem %s25_s17, 32  ;;  %p559_p6 = scmp.lt.s32.totalorder %s25_s17, %s25_s17 }
  0x12   :  { %p555_p5 = scmp.ne.s32.totalorder %s25_s17, %s554_s20  ;;  %p560_p7 = scmp.lt.s32.totalorder %s554_s20, %s554_s20 }
  0x14   :  { %p561_p8 = por %p560_p7, %p559_p6 }
  0x16   :  { %p562_p9 = pnand %p561_p8, %p555_p5 }
  0x18   :  { %565 = shalt.err (!%p562_p9)
}
  0x19   :  { %27 = dma.hbm_to_vmem [thread:$0]  %s752_s0, 32, %s25_s17, [#allocation3]  }
  0x1a   :  { %s574_s23 = scalar_lea.vmem %s48_s19, 1024  ;;  %p579_p11 = scmp.lt.s32.totalorder %s48_s19, %s48_s19 }
  0x1b   :  { %p575_p10 = scmp.ne.s32.totalorder %s48_s19, %s574_s23  ;;  %p580_p12 = scmp.lt.s32.totalorder %s574_s23, %s574_s23 }
  0x1d   :  { %p581_p13 = por %p580_p12, %p579_p11 }
  0x1f   :  { %p582_p0 = pnand %p581_p13, %p575_p10 }
  0x21   :  { %585 = shalt.err (!%p582_p0)
}
  0x22   :  { %53 = dma.hbm_to_vmem [thread:$0]  %s755_s3, 1024, %s48_s19, [#allocation6], %s635_s12, %s635_s12, %s636_s13  }
  0x23   :  { %s639_s25 = smov [#allocation8]  }
  0x24   :  { %s61_s26 = sshll.u32 %s639_s25, 4  ;;  %s62_s26 = int_to_ptr.vmem [resolvable:$true] %s61_s26 }
  0x25   :  { %s594_s27 = scalar_lea.vmem %s62_s26, 1024  ;;  %p599_p2 = scmp.lt.s32.totalorder %s62_s26, %s62_s26 }
  0x26   :  { %p595_p1 = scmp.ne.s32.totalorder %s62_s26, %s594_s27  ;;  %p600_p3 = scmp.lt.s32.totalorder %s594_s27, %s594_s27 }
  0x28   :  { %p601_p4 = por %p600_p3, %p599_p2 }
  0x2a   :  { %p602_p5 = pnand %p601_p4, %p595_p1 }
  0x2c   :  { %605 = shalt.err (!%p602_p5)
}
  0x2d   :  { %67 = dma.hbm_to_vmem [thread:$0]  %s757_s5, 1024, %s62_s26, [#allocation9], %s635_s12, %s635_s12, %s636_s13  }
  0x2e   :  { %626 = dma.done.wait [#allocation3], 32  }
  0x2f   :  { %627 = vsyncadd [#allocation3], 4294967264 }
  0x30   :  { %628 = dma.done.wait [#allocation6], 1152  }
  0x31   :  { %629 = vsyncadd [#allocation6], 4294966144 }
  0x32   :  { %630 = dma.done.wait [#allocation9], 1024  }
  0x33   :  { %631 = vsyncadd [#allocation9], 4294966272  ;;  %v640_v0 = vmov 0.0   ;;  %vm641_vm0 = vmmov 0   ;;  %v507_v1 = vld [vmem:[#allocation5] sm:$0xff]   ;;  %vm104_vm1 = vcmask 130048  }
  0x34   :  { %452 = vmatprep.subr.bf16.mxu0 %v640_v0  ;;  %454 = vmatprep.mubr.msk.bf16.mxu0 %vm641_vm0, %v640_v0  ;;  %v87_v2 = vld [vmem:[#allocation2] sm:$0x3]  ;;  %v508_v4 = vld [vmem:[#allocation7 + $0x38] sm:$0xff]   ;;  %v510_v6 = vld [vmem:[#allocation7 + $0x28] sm:$0xff]   ;;  %s642_s14 = smov [#allocation10]  }
  0x35   :  { %458 = vmatprep.subr.bf16.mxu1 %v640_v0  ;;  %474 = vmatprep.mubr.msk.bf16.mxu1 %vm641_vm0, %v640_v0  ;;  %v88_v3 = vpack.c.bf16 %v87_v2, %v87_v2  ;;  %v509_v5 = vld [vmem:[#allocation7 + $0x30] sm:$0xff]   ;;  %v511_v7 = vld [vmem:[#allocation7 + $0x20] sm:$0xff]   ;;  %v512_v8 = vld [vmem:[#allocation7 + $0x18] sm:$0xff]   ;;  %s398_s15 = sshll.u32 %s642_s14, 4  ;;  %s399_s15 = int_to_ptr.vmem [resolvable:$true] %s398_s15 }
  0x36   :  { %453 = vmatpush3.bf16.msra.mxu0 %v507_v1  ;;  %459 = vmatpush3.bf16.msra.mxu1 %v508_v4  ;;  %v513_v9 = vld [vmem:[#allocation7 + $0x10] sm:$0xff]   ;;  %v514_v10 = vld [vmem:[#allocation7 + $0x8] sm:$0xff]   ;;  %v515_v11 = vld [vmem:[#allocation7] sm:$0xff]   ;;  %p611_p7 = scmp.lt.s32.totalorder %s399_s15, %s399_s15 }
  0x37   :  { %478 = vmatprep.subr.bf16.mxu0 %v640_v0  ;;  %460 = vmatprep.subr.bf16.mxu1 %v640_v0  ;;  %v516_v12 = vld [vmem:[#allocation8 + $0x38] sm:$0xff]   ;;  %v517_v13 = vld [vmem:[#allocation8 + $0x30] sm:$0xff]   ;;  %v518_v14 = vld [vmem:[#allocation8 + $0x28] sm:$0xff]  }
  0x38   :  { %v519_v15 = vld [vmem:[#allocation8 + $0x20] sm:$0xff]   ;;  %v520_v16 = vld [vmem:[#allocation8 + $0x18] sm:$0xff]   ;;  %v521_v17 = vld [vmem:[#allocation8 + $0x10] sm:$0xff]  }
  0x39   :  { %455 = vmatmul.mubr.msk.bf16.vlgmr.msra.gmra.mxu0 %vm104_vm1, %v88_v3  ;;  %v409_v18 = vld [vmem:[%s754_s2] ss:$0 sm:$0xff]  ;;  %v522_v26 = vld [vmem:[#allocation8 + $0x8] sm:$0xff]   ;;  %v523_v27 = vld [vmem:[#allocation8] sm:$0xff]  }
  0x3a   :  { %494 = vmatprep.mubr.msk.bf16.mxu0 %vm641_vm0, %v640_v0  ;;  %461 = vmatpush3.bf16.msra.mxu1 %v509_v5  ;;  %v412_v28 = vld [vmem:[%s756_s4] ss:$0 sm:$0xff] }
  0x3b   :  { %462 = vmatprep.subr.bf16.mxu1 %v640_v0  ;;  %479 = vmatpush3.bf16.msra.mxu0 %v516_v12  ;;  %v421_v36 = vld [vmem:[%s758_s6] ss:$0 sm:$0xff]  ;;  %s606_s6 = scalar_lea.vmem %s399_s15, 32 }
  0x3c   :  { %480 = vmatprep.subr.bf16.mxu0 %v640_v0  ;;  %v430_v42 = vld [vmem:[%s759_s7] ss:$0 sm:$0xff]  ;;  %p607_p6 = scmp.ne.s32.totalorder %s399_s15, %s606_s6  ;;  %p612_p8 = scmp.lt.s32.totalorder %s606_s6, %s606_s6 }
  0x3d   :  { %v431_v44 = vld [vmem:[%s760_s8] ss:$0 sm:$0xff] }
  0x3e   :  { %463 = vmatpush3.bf16.msra.mxu1 %v510_v6  ;;  %p613_p9 = por %p612_p8, %p611_p7 }
  0x3f   :  { %464 = vmatprep.subr.bf16.mxu1 %v640_v0  ;;  %481 = vmatpush3.bf16.msra.mxu0 %v517_v13 }
  0x40   :  { %482 = vmatprep.subr.bf16.mxu0 %v640_v0  ;;  %p614_p10 = pnand %p613_p9, %p607_p6 }
  0x42   :  { %465 = vmatpush3.bf16.msra.mxu1 %v511_v7 }
  0x43   :  { %466 = vmatprep.subr.bf16.mxu1 %v640_v0  ;;  %483 = vmatpush3.bf16.msra.mxu0 %v518_v14 }
  0x44   :  { %484 = vmatprep.subr.bf16.mxu0 %v640_v0 }
  0x46   :  { %467 = vmatpush3.bf16.msra.mxu1 %v512_v8 }
  0x47   :  { %468 = vmatprep.subr.bf16.mxu1 %v640_v0  ;;  %485 = vmatpush3.bf16.msra.mxu0 %v519_v15 }
  0x48   :  { %486 = vmatprep.subr.bf16.mxu0 %v640_v0 }
  0x4a   :  { %469 = vmatpush3.bf16.msra.mxu1 %v513_v9 }
  0x4b   :  { %470 = vmatprep.subr.bf16.mxu1 %v640_v0  ;;  %487 = vmatpush3.bf16.msra.mxu0 %v520_v16 }
  0x4c   :  { %488 = vmatprep.subr.bf16.mxu0 %v640_v0 }
  0x4e   :  { %471 = vmatpush3.bf16.msra.mxu1 %v514_v10 }
  0x4f   :  { %472 = vmatprep.subr.bf16.mxu1 %v640_v0  ;;  %489 = vmatpush3.bf16.msra.mxu0 %v521_v17 }
  0x50   :  { %490 = vmatprep.subr.bf16.mxu0 %v640_v0 }
  0x52   :  { %473 = vmatpush3.bf16.msra.mxu1 %v515_v11 }
  0x53   :  { %491 = vmatpush3.bf16.msra.mxu0 %v522_v26 }
  0x54   :  { %492 = vmatprep.subr.bf16.mxu0 %v640_v0 }
  0x57   :  { %493 = vmatpush3.bf16.msra.mxu0 %v523_v27 }
  0xf9   :  { %v142_v19 = vpop.f32.mrf.mxu0 }
  0xfa   :  { %v143_v20 = vadd.f32 %v409_v18, %v142_v19 }
  0xfb   :  { %v456_v21 = vpop.f32.mrf.mxu0 }
  0xfc   :  { %v148_v22 = vmax.f32 %v143_v20, 0.0 }
  0xfd   :  { %v145_v23 = vpop.f32.mrf.mxu0 }
  0xfe   :  { %v149_v24 = vpack.c.bf16 %v148_v22, %v148_v22 }
  0xff   :  { %v457_v25 = vpop.f32.mrf.mxu0 }
 0x100   :  { %475 = vmatmul.mubr.bf16.vlgmr.msra.gmra.mxu1 %v149_v24 }
 0x1c0   :  { %v255_v29 = vpop.f32.mrf.mxu1 }
 0x1c1   :  { %v256_v30 = vadd.f32 %v412_v28, %v255_v29 }
 0x1c2   :  { %v476_v31 = vpop.f32.mrf.mxu1 }
 0x1c3   :  { %v261_v32 = vmax.f32 %v256_v30, 0.0 }
 0x1c4   :  { %v258_v33 = vpop.f32.mrf.mxu1 }
 0x1c5   :  { %v262_v34 = vpack.c.bf16 %v261_v32, %v261_v32 }
 0x1c6   :  { %v477_v35 = vpop.f32.mrf.mxu1 }
 0x1c7   :  { %495 = vmatmul.mubr.bf16.vlgmr.msra.gmra.mxu0 %v262_v34 }
 0x287   :  { %v368_v37 = vpop.f32.mrf.mxu0 }
 0x288   :  { %v369_v38 = vadd.f32 %v421_v36, %v368_v37 }
 0x289   :  { %v496_v39 = vpop.f32.mrf.mxu0 }
 0x28a   :  { %524 = vtanh.f32 %v369_v38 }
 0x28b   :  { %v371_v40 = vpop.f32.mrf.mxu0 }
 0x28d   :  { %v497_v41 = vpop.f32.mrf.mxu0 }
 0x297   :  { %v525_v43 = vpop.eup %524 }
 0x298   :  { %v382_v45 = vmul.f32 %v525_v43, %v430_v42 }
 0x29a   :  { %v390_v46 = vadd.f32 %v431_v44, %v382_v45 }
 0x29c   :  { %391 = vst [vmem:[#allocation10] sm:$0x3] %v390_v46 }
 0x29d   :  { %617 = shalt.err (!%p614_p10)
}
 0x29e   :  { %401 = dma.vmem_to_hbm [thread:$0]  %s399_s15, 32, %s761_s9, [#allocation4]  }
 0x29f   :  { %632 = dma.done.wait [#allocation4], 32  }
 0x2a0   :  { %633 = vsyncadd [#allocation4], 4294967264 }
 0x2a1   :  { %405 = vsyncpa [#allocation3], 1 }
 0x2a2   :  { %406 = vsyncpa [#allocation6], 1 }
 0x2a3   :  { %407 = vsyncpa [#allocation9], 1 }
 0x2a4   :  { %408 = vsyncpa [#allocation4], 1 }

</bundles_post_ra>
